<compile_context>
chip_gen: v5e
topology: v5e:2x2
jax: 0.10.0
libtpu: 0.0.40
codegen_flags: <defaults>
</compile_context>

<pallas_src>
import functools
import math

import jax
import jax.numpy as jnp
from jax import lax
from jax.experimental import pallas as pl
from jax.experimental.pallas import tpu as pltpu


_ONEHOT_MAX_VOCAB = 1024            # one-hot/MXU path only below this vocab
_ONEHOT_MAX_TABLE_BYTES = 4 << 20   # ...and only if the table is this small
_N_INFLIGHT = 8                     # outstanding row DMAs in the gather path


def _round_up(x, m):
    return (x + m - 1) // m * m


# ----------------------------------------------------------------------------
# Path 1: tiny vocab -- VMEM-resident table, one-hot matmul on the MXU.
# ----------------------------------------------------------------------------
def _onehot_kernel(tok_ref, emb_ref, out_ref, *, vocab_size, scale):
    """Gather a block of tb rows via one_hot @ table on the MXU, then scale.

    tok_ref : VMEM (1, tb, 1) int32  -- token ids (sublane axis; lane-sparse
                                        but tiny, accepted per review)
    emb_ref : VMEM (V, E)            -- full table, resident every step
    out_ref : VMEM (tb, E)           -- output tile (lane-dense store)
    """
    tb = out_ref.shape[0]
    tok = tok_ref[0]                                             # (tb, 1) int32
    iota_v = lax.broadcasted_iota(jnp.int32, (tb, vocab_size), 1)
    # Out-of-range / pad ids -> all-zero one-hot row (no OOB table read).
    one_hot = (tok == iota_v).astype(emb_ref.dtype)              # (tb, V)
    gathered = jnp.dot(one_hot, emb_ref[...],
                       preferred_element_type=jnp.float32)       # MXU, f32 acc
    out_ref[...] = (gathered * scale).astype(out_ref.dtype)


def _onehot_embedding(flat_tokens, emb_table, *, tb, scale):
    n_pad, = flat_tokens.shape
    V, E = emb_table.shape
    num_blocks = n_pad // tb
    tok3d = flat_tokens.reshape(num_blocks, tb, 1)
    itemsize = jnp.dtype(emb_table.dtype).itemsize

    def run(single_buffer_table):
        table_kwargs = {}
        if single_buffer_table:
            # Constant index_map -> the table block never changes; a second
            # pipeline buffer would only waste VMEM.
            table_kwargs["pipeline_mode"] = pl.Buffered(1)
        table_bufs = 1 if single_buffer_table else 2
        vmem_limit = (table_bufs * V * E * itemsize     # resident table
                      + 2 * tb * E * itemsize           # double-buffered out tile
                      + 2 * tb * 128 * 4                # token ids (lane padded)
                      + tb * V * 4                      # one-hot intermediate
                      + (4 << 20))                      # compiler scratch slack
        vmem_limit = int(min(max(vmem_limit, 16 << 20), 48 << 20))
        out = pl.pallas_call(
            functools.partial(_onehot_kernel, vocab_size=V, scale=scale),
            out_shape=jax.ShapeDtypeStruct((n_pad, E), emb_table.dtype),
            grid_spec=pltpu.PrefetchScalarGridSpec(
                num_scalar_prefetch=0,
                grid=(num_blocks,),
                in_specs=[
                    pl.BlockSpec((1, tb, 1), lambda i: (i, 0, 0)),
                    pl.BlockSpec((V, E), lambda i: (0, 0), **table_kwargs),
                ],
                out_specs=pl.BlockSpec((tb, E), lambda i: (i, 0)),
            ),
            compiler_params=pltpu.CompilerParams(
                dimension_semantics=("parallel",),
                vmem_limit_bytes=vmem_limit,
            ),
        )(tok3d, emb_table)
        return jax.block_until_ready(out)

    try:
        return run(True)
    except Exception:
        # pipeline_mode=pl.Buffered(1) unsupported on this jax build; fall back
        # to default double buffering (table is <= 4 MiB on this path, so the
        # extra buffer is bounded).
        return run(False)


# ----------------------------------------------------------------------------
# Path 2: general vocab -- table stays in HBM, DMA row gather per block.
# ----------------------------------------------------------------------------
def _gather_kernel(tok_sref, emb_hbm, out_ref, sem, *, tb, vocab_size, scale):
    """DMA-gather tb rows of the HBM table into the output tile, then scale.

    tok_sref : SMEM (n_pad,) int32  -- all token ids (scalar prefetch)
    emb_hbm  : ANY/HBM (V, E)       -- embedding table, never copied to VMEM
    out_ref  : VMEM (tb, E)         -- output tile (DMA destination)
    sem      : DMA semaphores (_N_INFLIGHT,)
    """
    base = pl.program_id(0) * tb

    def row_copy(i, slot):
        tok = jnp.clip(tok_sref[base + i], 0, vocab_size - 1)
        return pltpu.make_async_copy(
            emb_hbm.at[pl.ds(tok, 1)],       # (1, E) row in HBM
            out_ref.at[pl.ds(i, 1)],         # (1, E) row of the output tile
            sem.at[slot])

    # Prime a window of _N_INFLIGHT outstanding row DMAs (tb >= _N_INFLIGHT).
    for i in range(min(_N_INFLIGHT, tb)):
        row_copy(i, i).start()

    def body(i, carry):
        slot = lax.rem(i, _N_INFLIGHT)
        row_copy(i, slot).wait()             # row i has landed in out_ref
        @pl.when(i + _N_INFLIGHT < tb)
        def _():
            row_copy(i + _N_INFLIGHT, slot).start()
        return carry

    lax.fori_loop(0, tb, body, 0)
    # All rows gathered; apply the sqrt(E) scale as one dense pass.
    out_ref[...] = (out_ref[...].astype(jnp.float32) * scale).astype(out_ref.dtype)


def _gather_embedding(flat_tokens, emb_table, *, tb, scale):
    n_pad, = flat_tokens.shape
    V, E = emb_table.shape
    num_blocks = n_pad // tb
    itemsize = jnp.dtype(emb_table.dtype).itemsize
    vmem_limit = int(min(max(2 * tb * E * itemsize + (4 << 20), 8 << 20), 48 << 20))
    return pl.pallas_call(
        functools.partial(_gather_kernel, tb=tb, vocab_size=V, scale=scale),
        out_shape=jax.ShapeDtypeStruct((n_pad, E), emb_table.dtype),
        grid_spec=pltpu.PrefetchScalarGridSpec(
            num_scalar_prefetch=1,
            grid=(num_blocks,),
            in_specs=[pl.BlockSpec(memory_space=pl.ANY)],   # table stays in HBM
            out_specs=pl.BlockSpec((tb, E), lambda i, tok: (i, 0)),
            scratch_shapes=[pltpu.SemaphoreType.DMA((_N_INFLIGHT,))],
        ),
        compiler_params=pltpu.CompilerParams(
            dimension_semantics=("parallel",),
            vmem_limit_bytes=vmem_limit,
        ),
    )(flat_tokens, emb_table)


# ----------------------------------------------------------------------------
# Public wrapper:  nn.Embedding(V, E)(tokens.long()) * sqrt(E)
# ----------------------------------------------------------------------------
def token_embedding(tokens, emb_table, *, block_tokens=None):
    B, S = tokens.shape
    V, E = emb_table.shape
    N = B * S
    scale = float(math.sqrt(E))
    itemsize = jnp.dtype(emb_table.dtype).itemsize

    use_onehot = (V <= _ONEHOT_MAX_VOCAB
                  and V * E * itemsize <= _ONEHOT_MAX_TABLE_BYTES)

    # Big token blocks amortize the ~0.35us/grid-step overhead and keep output
    # stores lane/sublane dense; cap by the (padded) token count.
    tb = block_tokens if block_tokens is not None else (512 if use_onehot else 256)
    tb = max(8, min(_round_up(tb, 8), _round_up(N, 8)))
    num_blocks = -(-N // tb)
    n_pad = num_blocks * tb

    flat = tokens.reshape(N).astype(jnp.int32)
    if n_pad != N:
        flat = jnp.pad(flat, (0, n_pad - N))   # pad with token 0; sliced off below

    if use_onehot:
        out = _onehot_embedding(flat, emb_table, tb=tb, scale=scale)
    else:
        out = _gather_embedding(flat, emb_table, tb=tb, scale=scale)
    return out[:N].reshape(B, S, E)


if __name__ == "__main__":
    key = jax.random.PRNGKey(0)
    k1, k2, k3, k4 = jax.random.split(key, 4)

    # --- tiny-vocab path (one-hot MXU), demo sizes from the module ---
    vocab_size, emb_size, batch, seq = 32, 128, 2, 8
    emb_table = jax.random.normal(k1, (vocab_size, emb_size), dtype=jnp.float32)
    tokens = jax.random.randint(k2, (batch, seq), 0, vocab_size, dtype=jnp.int32)
    out = jax.block_until_ready(token_embedding(tokens, emb_table))
    ref = jnp.take(emb_table, tokens, axis=0) * math.sqrt(emb_size)
    assert out.shape == (batch, seq, emb_size)
    assert jnp.allclose(out, ref, atol=1e-5, rtol=1e-5)

    # --- larger-vocab path (pl.ANY table + double-buffered DMA row gather) ---
    vocab2, emb2, batch2, seq2 = 4096, 128, 2, 256
    emb_table2 = jax.random.normal(k3, (vocab2, emb2), dtype=jnp.float32)
    tokens2 = jax.random.randint(k4, (batch2, seq2), 0, vocab2, dtype=jnp.int32)
    out2 = jax.block_until_ready(token_embedding(tokens2, emb_table2))
    ref2 = jnp.take(emb_table2, tokens2, axis=0) * math.sqrt(emb2)
    assert out2.shape == (batch2, seq2, emb2)
    assert jnp.allclose(out2, ref2, atol=1e-5, rtol=1e-5)

    print("KERNEL_OK")
</pallas_src>

<mosaic_0001>
module attributes {stable_mosaic.version = 11 : i64} {
  func.func @_onehot_kernel(%arg0: i32, %arg1: memref<1x16x1xi32, #tpu.memory_space<vmem>>, %arg2: memref<32x128xf32, #tpu.memory_space<vmem>>, %arg3: memref<16x128xf32, #tpu.memory_space<vmem>>) attributes {dimension_semantics = [#tpu.dimension_semantics<parallel>], iteration_bounds = array<i64: 1>, scalar_prefetch = 0 : i64, scratch_operands = 0 : i64, tpu.core_type = #tpu.core_type<tc>, window_params = [{transform_indices = @transform_0, window_bounds = array<i64: 1, 16, 1>}, {pipeline_mode = #tpu.pipeline_mode<synchronous>, transform_indices = @transform_1, window_bounds = array<i64: 32, 128>}, {transform_indices = @transform_2, window_bounds = array<i64: 16, 128>}]} {
    %c0 = arith.constant 0 : index
    %c0_0 = arith.constant 0 : index
    %c0_1 = arith.constant 0 : index
    %0 = vector.load %arg1[%c0, %c0_0, %c0_1] : memref<1x16x1xi32, #tpu.memory_space<vmem>>, vector<1x16x1xi32>
    %1 = vector.shape_cast %0 : vector<1x16x1xi32> to vector<16x1xi32>
    %2 = tpu.iota {dimensions = array<i32: 1>} : vector<16x32xi32>
    %3 = vector.broadcast %1 : vector<16x1xi32> to vector<16x32xi32>
    %4 = arith.cmpi eq, %3, %2 : vector<16x32xi32>
    %5 = arith.extui %4 : vector<16x32xi1> to vector<16x32xi32>
    %6 = arith.sitofp %5 : vector<16x32xi32> to vector<16x32xf32>
    %c0_2 = arith.constant 0 : index
    %c0_3 = arith.constant 0 : index
    %7 = vector.load %arg2[%c0_2, %c0_3] : memref<32x128xf32, #tpu.memory_space<vmem>>, vector<32x128xf32>
    %cst = arith.constant dense<0.000000e+00> : vector<16x128xf32>
    %8 = tpu.matmul %6, %7, %cst {dimension_numbers = #tpu.dot_dimension_numbers<[1], [0], [0], [1], [0, 0, 1, 1], [], []>} : vector<16x32xf32>, vector<32x128xf32>, vector<16x128xf32> -> vector<16x128xf32>
    %cst_4 = arith.constant 11.3137083 : f32
    %9 = vector.broadcast %cst_4 : f32 to vector<16x128xf32>
    %10 = arith.mulf %8, %9 : vector<16x128xf32>
    %c0_5 = arith.constant 0 : index
    %c0_6 = arith.constant 0 : index
    %11 = vector.load %arg3[%c0_5, %c0_6] : memref<16x128xf32, #tpu.memory_space<vmem>>, vector<16x128xf32>
    tpu.vector_store %arg3[%c0_5, %c0_6], %10 {strides = array<i32>} : memref<16x128xf32, #tpu.memory_space<vmem>>, vector<16x128xf32>,
    return
  }
  func.func @transform_0(%arg0: i32) -> (i32, i32, i32) {
    %c0_i32 = arith.constant 0 : i32
    %c0_i32_0 = arith.constant 0 : i32
    %c0_i32_1 = arith.constant 0 : i32
    return %arg0, %c0_i32, %c0_i32_0 : i32, i32, i32
  }
  func.func @transform_1(%arg0: i32) -> (i32, i32) {
    %c0_i32 = arith.constant 0 : i32
    %c0_i32_0 = arith.constant 0 : i32
    %c0_i32_1 = arith.constant 0 : i32
    return %c0_i32, %c0_i32_0 : i32, i32
  }
  func.func @transform_2(%arg0: i32) -> (i32, i32) {
    %c0_i32 = arith.constant 0 : i32
    %c0_i32_0 = arith.constant 0 : i32
    return %arg0, %c0_i32 : i32, i32
  }
}

module attributes {stable_mosaic.version = 11 : i64} {
  func.func @_onehot_kernel(%arg0: i32, %arg1: memref<1x16x1xi32, #tpu.memory_space<vmem>>, %arg2: memref<32x128xf32, #tpu.memory_space<vmem>>, %arg3: memref<16x128xf32, #tpu.memory_space<vmem>>) attributes {dimension_semantics = [#tpu.dimension_semantics<parallel>], iteration_bounds = array<i64: 1>, scalar_prefetch = 0 : i64, scratch_operands = 0 : i64, tpu.core_type = #tpu.core_type<tc>, window_params = [{transform_indices = @transform_0, window_bounds = array<i64: 1, 16, 1>}, {pipeline_mode = #tpu.pipeline_mode<synchronous>, transform_indices = @transform_1, window_bounds = array<i64: 32, 128>}, {transform_indices = @transform_2, window_bounds = array<i64: 16, 128>}]} {
    %c0 = arith.constant 0 : index
    %c0_0 = arith.constant 0 : index
    %c0_1 = arith.constant 0 : index
    %0 = vector.load %arg1[%c0, %c0_0, %c0_1] : memref<1x16x1xi32, #tpu.memory_space<vmem>>, vector<1x16x1xi32>
    %1 = vector.shape_cast %0 : vector<1x16x1xi32> to vector<16x1xi32>
    %2 = tpu.iota {dimensions = array<i32: 1>} : vector<16x32xi32>
    %3 = vector.broadcast %1 : vector<16x1xi32> to vector<16x32xi32>
    %4 = arith.cmpi eq, %3, %2 : vector<16x32xi32>
    %5 = arith.extui %4 : vector<16x32xi1> to vector<16x32xi32>
    %6 = arith.sitofp %5 : vector<16x32xi32> to vector<16x32xf32>
    %c0_2 = arith.constant 0 : index
    %c0_3 = arith.constant 0 : index
    %7 = vector.load %arg2[%c0_2, %c0_3] : memref<32x128xf32, #tpu.memory_space<vmem>>, vector<32x128xf32>
    %cst = arith.constant dense<0.000000e+00> : vector<16x128xf32>
    %8 = tpu.matmul %6, %7, %cst {dimension_numbers = #tpu.dot_dimension_numbers<[1], [0], [0], [1], [0, 0, 1, 1], [], []>} : vector<16x32xf32>, vector<32x128xf32>, vector<16x128xf32> -> vector<16x128xf32>
    %cst_4 = arith.constant 11.3137083 : f32
    %9 = vector.broadcast %cst_4 : f32 to vector<16x128xf32>
    %10 = arith.mulf %8, %9 : vector<16x128xf32>
    %c0_5 = arith.constant 0 : index
    %c0_6 = arith.constant 0 : index
    %11 = vector.load %arg3[%c0_5, %c0_6] : memref<16x128xf32, #tpu.memory_space<vmem>>, vector<16x128xf32>
    tpu.vector_store %arg3[%c0_5, %c0_6], %10 {strides = array<i32>} : memref<16x128xf32, #tpu.memory_space<vmem>>, vector<16x128xf32>,
    return
  }
  func.func @transform_0(%arg0: i32) -> (i32, i32, i32) {
    %c0_i32 = arith.constant 0 : i32
    %c0_i32_0 = arith.constant 0 : i32
    %c0_i32_1 = arith.constant 0 : i32
    return %arg0, %c0_i32, %c0_i32_0 : i32, i32, i32
  }
  func.func @transform_1(%arg0: i32) -> (i32, i32) {
    %c0_i32 = arith.constant 0 : i32
    %c0_i32_0 = arith.constant 0 : i32
    %c0_i32_1 = arith.constant 0 : i32
    return %c0_i32, %c0_i32_0 : i32, i32
  }
  func.func @transform_2(%arg0: i32) -> (i32, i32) {
    %c0_i32 = arith.constant 0 : i32
    %c0_i32_0 = arith.constant 0 : i32
    return %arg0, %c0_i32 : i32, i32
  }
}

</mosaic_0001>

<bundles_post_ra>
// kernel: tpu_custom_call.1
= control target key start
LH: loop header
LB: loop body
LE: loop exit
PB: predicated region body
PF: predicated region fallthrough
CT: control target
= control target key end

     0   :  { %7 = vsyncpa [#allocation3], 0  ;;  %s207_s0 = inlined_call_operand.vmem [shape: s32[1,16,1], index: 0, kind: input, shape index: {}]   ;;  %s208_s1 = inlined_call_operand.hbm [shape: f32[32,128], index: 1, kind: input, shape index: {}]   ;;  %s209_s2 = inlined_call_operand.hbm [shape: f32[16,128], index: 2, kind: output, shape index: {}]  }
   0x1   :  { %8 = vsyncpa [#allocation4], 0  ;;  %s15_s11 = sshll.u32 %s208_s1, 4  ;;  %s168_s12 = smov [#allocation2]   ;;  %s16_s11 = int_to_ptr.hbm [resolvable:$true] %s15_s11 }
   0x2   :  { %s17_s13 = sshll.u32 %s168_s12, 4  ;;  %s169_s14 = smov 128   ;;  %s18_s13 = int_to_ptr.vmem [resolvable:$true] %s17_s13 }
   0x3   :  { %s170_s15 = smov 8  }
   0x4   :  { %23 = dma.hbm_to_vmem [thread:$0]  %s16_s11, 512, %s18_s13, [#allocation3], %s169_s14, %s169_s14, %s170_s15  }
   0x5   :  { %164 = dma.done.wait [#allocation3], 512  }
   0x6   :  { %165 = vsyncadd [#allocation3], 4294966784  ;;  %v171_v0 = vmov 0   ;;  %v28_v1 = vld [vmem:[%s207_s0] sm:$0xff]  ;;  %v47_v2 = vld [vmem:[#allocation2 + $0x18] sm:$0xff]  ;;  %v30_v7 = vlaneseq  ;;  %vm48_vm0 = vcmask 261120  }
   0x7   :  { %115 = vset.pattern.permute.xlu0 %v171_v0  ;;  %67 = vmatpush.msra.mxu0 %v47_v2  ;;  %v46_v3 = vld [vmem:[#allocation2 + $0x10] sm:$0xff]  ;;  %v45_v4 = vld [vmem:[#allocation2 + $0x8] sm:$0xff]  ;;  %v44_v6 = vld [vmem:[#allocation2] sm:$0xff]  ;;  %v172_v10 = vmov 0.0   ;;  %s88_s22 = sshll.u32 %s209_s2, 4  ;;  %s89_s22 = int_to_ptr.hbm [resolvable:$true] %s88_s22 }
   0x8   :  { %33 = vperm.xlu0 %115, %v28_v1   ;;  %105 = vmatpush.msra.mxu1 %v47_v2  ;;  %v29_v5 = vld [vmem:[%s207_s0 + $0x8] sm:$0xff]  ;;  %v31_v8 = vand.u32 127, %v30_v7  ;;  %s173_s0 = smov [#allocation5]  }
   0x9   :  { %68 = vmatpush.msra.mxu0 %v46_v3  ;;  %s86_s19 = sshll.u32 %s173_s0, 4  ;;  %s87_s19 = int_to_ptr.vmem [resolvable:$true] %s86_s19 }
   0xa   :  { %106 = vmatpush.msra.mxu1 %v46_v3 }
   0xb   :  { %69 = vmatpush.msra.mxu0 %v45_v4 }
   0xc   :  { %107 = vmatpush.msra.mxu1 %v45_v4 }
   0xd   :  { %70 = vmatpush.msra.mxu0 %v44_v6 }
   0xe   :  { %108 = vmatpush.msra.mxu1 %v44_v6 }
  0x10   :  { %36 = vperm.xlu0 %115, %v29_v5  }
  0x7a   :  { %v34_v9 = vpop.permute.xlu0 %33 }
  0x7b   :  { %vm38_vm1 = vcmp.eq.s32.totalorder %v34_v9, %v31_v8 }
  0x7c   :  { %v101_v11 = vsel %vm38_vm1, 1.0, %v172_v10 }
  0x7d   :  { %103 = vmatmul.msk.f32.vlgmr.msra.gmra.mxu0 %vm48_vm0, %v101_v11 }
  0x82   :  { %v37_v12 = vpop.permute.xlu0 %36 }
  0x83   :  { %vm39_vm2 = vcmp.eq.s32.totalorder %v37_v12, %v31_v8 }
  0x84   :  { %v102_v13 = vsel %vm39_vm2, 1.0, %v172_v10 }
  0x85   :  { %104 = vmatmul.msk.f32.vlgmr.msra.gmra.mxu1 %vm48_vm0, %v102_v13 }
  0xfa   :  { %v72_v14 = vpop.f32.mrf.mxu0 }
  0xfb   :  { %v78_v15 = vmul.f32 11.313708, %v72_v14 }
  0xfd   :  { %80 = vst [vmem:[#allocation5] sm:$0xff] %v78_v15 }
 0x102   :  { %v75_v16 = vpop.f32.mrf.mxu1 }
 0x103   :  { %v79_v17 = vmul.f32 11.313708, %v75_v16 }
 0x105   :  { %81 = vst [vmem:[#allocation5 + $0x8] sm:$0xff] %v79_v17 }
 0x106   :  { %94 = dma.vmem_to_hbm [thread:$0]  %s87_s19, 256, %s89_s22, [#allocation4], %s169_s14, %s169_s14, %s170_s15  }
 0x107   :  { %166 = dma.done.wait [#allocation4], 256  }
 0x108   :  { %167 = vsyncadd [#allocation4], 4294967040 }
 0x109   :  { %99 = vsyncpa [#allocation3], 1 }
 0x10a   :  { %100 = vsyncpa [#allocation4], 1 }

// kernel: tpu_custom_call.1
= control target key start
LH: loop header
LB: loop body
LE: loop exit
PB: predicated region body
PF: predicated region fallthrough
CT: control target
= control target key end

     0   :  { %7 = vsyncpa [#allocation3], 0  ;;  %s207_s0 = inlined_call_operand.vmem [shape: s32[1,16,1], index: 0, kind: input, shape index: {}]   ;;  %s208_s1 = inlined_call_operand.hbm [shape: f32[32,128], index: 1, kind: input, shape index: {}]   ;;  %s209_s2 = inlined_call_operand.hbm [shape: f32[16,128], index: 2, kind: output, shape index: {}]  }
   0x1   :  { %8 = vsyncpa [#allocation4], 0  ;;  %s15_s11 = sshll.u32 %s208_s1, 4  ;;  %s168_s12 = smov [#allocation2]   ;;  %s16_s11 = int_to_ptr.hbm [resolvable:$true] %s15_s11 }
   0x2   :  { %s17_s13 = sshll.u32 %s168_s12, 4  ;;  %s169_s14 = smov 128   ;;  %s18_s13 = int_to_ptr.vmem [resolvable:$true] %s17_s13 }
   0x3   :  { %s170_s15 = smov 8  }
   0x4   :  { %23 = dma.hbm_to_vmem [thread:$0]  %s16_s11, 512, %s18_s13, [#allocation3], %s169_s14, %s169_s14, %s170_s15  }
   0x5   :  { %164 = dma.done.wait [#allocation3], 512  }
   0x6   :  { %165 = vsyncadd [#allocation3], 4294966784  ;;  %v171_v0 = vmov 0   ;;  %v28_v1 = vld [vmem:[%s207_s0] sm:$0xff]  ;;  %v47_v2 = vld [vmem:[#allocation2 + $0x18] sm:$0xff]  ;;  %v30_v7 = vlaneseq  ;;  %vm48_vm0 = vcmask 261120  }
   0x7   :  { %115 = vset.pattern.permute.xlu0 %v171_v0  ;;  %67 = vmatpush.msra.mxu0 %v47_v2  ;;  %v46_v3 = vld [vmem:[#allocation2 + $0x10] sm:$0xff]  ;;  %v45_v4 = vld [vmem:[#allocation2 + $0x8] sm:$0xff]  ;;  %v44_v6 = vld [vmem:[#allocation2] sm:$0xff]  ;;  %v172_v10 = vmov 0.0   ;;  %s88_s22 = sshll.u32 %s209_s2, 4  ;;  %s89_s22 = int_to_ptr.hbm [resolvable:$true] %s88_s22 }
   0x8   :  { %33 = vperm.xlu0 %115, %v28_v1   ;;  %105 = vmatpush.msra.mxu1 %v47_v2  ;;  %v29_v5 = vld [vmem:[%s207_s0 + $0x8] sm:$0xff]  ;;  %v31_v8 = vand.u32 127, %v30_v7  ;;  %s173_s0 = smov [#allocation5]  }
   0x9   :  { %68 = vmatpush.msra.mxu0 %v46_v3  ;;  %s86_s19 = sshll.u32 %s173_s0, 4  ;;  %s87_s19 = int_to_ptr.vmem [resolvable:$true] %s86_s19 }
   0xa   :  { %106 = vmatpush.msra.mxu1 %v46_v3 }
   0xb   :  { %69 = vmatpush.msra.mxu0 %v45_v4 }
   0xc   :  { %107 = vmatpush.msra.mxu1 %v45_v4 }
   0xd   :  { %70 = vmatpush.msra.mxu0 %v44_v6 }
   0xe   :  { %108 = vmatpush.msra.mxu1 %v44_v6 }
  0x10   :  { %36 = vperm.xlu0 %115, %v29_v5  }
  0x7a   :  { %v34_v9 = vpop.permute.xlu0 %33 }
  0x7b   :  { %vm38_vm1 = vcmp.eq.s32.totalorder %v34_v9, %v31_v8 }
  0x7c   :  { %v101_v11 = vsel %vm38_vm1, 1.0, %v172_v10 }
  0x7d   :  { %103 = vmatmul.msk.f32.vlgmr.msra.gmra.mxu0 %vm48_vm0, %v101_v11 }
  0x82   :  { %v37_v12 = vpop.permute.xlu0 %36 }
  0x83   :  { %vm39_vm2 = vcmp.eq.s32.totalorder %v37_v12, %v31_v8 }
  0x84   :  { %v102_v13 = vsel %vm39_vm2, 1.0, %v172_v10 }
  0x85   :  { %104 = vmatmul.msk.f32.vlgmr.msra.gmra.mxu1 %vm48_vm0, %v102_v13 }
  0xfa   :  { %v72_v14 = vpop.f32.mrf.mxu0 }
  0xfb   :  { %v78_v15 = vmul.f32 11.313708, %v72_v14 }
  0xfd   :  { %80 = vst [vmem:[#allocation5] sm:$0xff] %v78_v15 }
 0x102   :  { %v75_v16 = vpop.f32.mrf.mxu1 }
 0x103   :  { %v79_v17 = vmul.f32 11.313708, %v75_v16 }
 0x105   :  { %81 = vst [vmem:[#allocation5 + $0x8] sm:$0xff] %v79_v17 }
 0x106   :  { %94 = dma.vmem_to_hbm [thread:$0]  %s87_s19, 256, %s89_s22, [#allocation4], %s169_s14, %s169_s14, %s170_s15  }
 0x107   :  { %166 = dma.done.wait [#allocation4], 256  }
 0x108   :  { %167 = vsyncadd [#allocation4], 4294967040 }
 0x109   :  { %99 = vsyncpa [#allocation3], 1 }
 0x10a   :  { %100 = vsyncpa [#allocation4], 1 }

</bundles_post_ra>
